<compile_context>
chip_gen: v5e
topology: v5e:2x2
jax: 0.10.0
libtpu: 0.0.40
codegen_flags: <defaults>
</compile_context>

<pallas_src>
import jax
import jax.numpy as jnp
from jax.experimental import pallas as pl
from jax.experimental.pallas import tpu as pltpu


def _gcn_kernel(adj_ref, x_ref, w1_ref, b1_ref, w2_ref, b2_ref,
                wf_ref, bf_ref, out_ref):
    adj = adj_ref[...]                       # [R, R]   block-diagonal A_hat
    cdt = adj.dtype                          # compute dtype (f32 or bf16)

    # --- GCNConv 1: A_hat @ (x @ W1) + b1, ReLU ---
    h = jnp.dot(x_ref[...], w1_ref[...], preferred_element_type=jnp.float32)
    h = jnp.dot(adj, h.astype(cdt), preferred_element_type=jnp.float32)
    h = jnp.maximum(h + b1_ref[...], 0.0)                      # [R, H] f32

    # --- GCNConv 2: A_hat @ (h @ W2) + b2, ReLU ---
    h = jnp.dot(h.astype(cdt), w2_ref[...], preferred_element_type=jnp.float32)
    h = jnp.dot(adj, h.astype(cdt), preferred_element_type=jnp.float32)
    h = jnp.maximum(h + b2_ref[...], 0.0)                      # [R, H] f32

    # --- Linear head (no lane padding -> no softmax mask needed) ---
    logits = jnp.dot(h.astype(cdt), wf_ref[...],
                     preferred_element_type=jnp.float32) + bf_ref[...]

    # --- log_softmax over the class dim ---
    m = jnp.max(logits, axis=1, keepdims=True)
    z = logits - m
    lse = jnp.log(jnp.sum(jnp.exp(z), axis=1, keepdims=True))
    out_ref[...] = (z - lse).astype(out_ref.dtype)


def gconv_model_forward(x, adj, params, *, rows_per_block=128,
                        compute_dtype=jnp.float32):
    """x: [B, N, Fin] float32, adj: [B, N, N] normalized adjacency (per graph)."""
    B, N, Fin = x.shape
    H = params["w1"].shape[1]
    out_dim = params["wf"].shape[1]

    # Graphs per grid step: fill >= rows_per_block MXU rows per matmul.
    # (rows_per_block=256 fully fills a v6e/v7x MXU tile; 128 keeps >=2 grid
    #  steps at the test sizes so v7x's two TensorCores both get work.)
    G = max(1, rows_per_block // N)
    G = min(G, B)
    num_blocks = -(-B // G)                  # ceil
    B_pad = num_blocks * G
    R = G * N

    if B_pad != B:                           # pad batch with empty graphs
        pad = B_pad - B
        x = jnp.concatenate([x, jnp.zeros((pad, N, Fin), x.dtype)], axis=0)
        adj = jnp.concatenate([adj, jnp.zeros((pad, N, N), adj.dtype)], axis=0)

    # Block-diagonal adjacency per grid step: [num_blocks, R, R].
    adj4 = adj.reshape(num_blocks, G, N, N)
    eye = jnp.eye(G, dtype=adj.dtype)
    adj_bd = jnp.einsum("bgij,gh->bgihj", adj4, eye).reshape(num_blocks, R, R)
    x_flat = x.reshape(num_blocks, R, Fin)

    cdt = compute_dtype
    adj_bd = adj_bd.astype(cdt)
    x_flat = x_flat.astype(cdt)
    w1 = params["w1"].astype(cdt)
    w2 = params["w2"].astype(cdt)
    wf = params["wf"].astype(cdt)
    b1 = params["b1"].astype(jnp.float32)    # biases added post f32-accumulation
    b2 = params["b2"].astype(jnp.float32)
    bf = params["bf"].astype(jnp.float32)

    csz = jnp.dtype(cdt).itemsize
    flops = 2 * num_blocks * (R * Fin * H + R * R * H        # conv1
                              + R * H * H + R * R * H        # conv2
                              + R * H * out_dim)             # head
    bytes_accessed = (num_blocks * R * R * csz + num_blocks * R * Fin * csz
                      + (Fin * H + H * H + H * out_dim) * csz
                      + (2 * H + out_dim) * 4
                      + num_blocks * R * out_dim * 4)
    cost = pl.CostEstimate(flops=int(flops),
                           transcendentals=int(num_blocks * R * (out_dim + 1)),
                           bytes_accessed=int(bytes_accessed))

    out = pl.pallas_call(
        _gcn_kernel,
        out_shape=jax.ShapeDtypeStruct((num_blocks, R, out_dim), jnp.float32),
        grid=(num_blocks,),
        in_specs=[
            pl.BlockSpec((None, R, R), lambda b: (b, 0, 0)),     # block-diag A_hat
            pl.BlockSpec((None, R, Fin), lambda b: (b, 0, 0)),   # node features
            pl.BlockSpec((Fin, H), lambda b: (0, 0)),            # W1 (resident)
            pl.BlockSpec((1, H), lambda b: (0, 0)),              # b1
            pl.BlockSpec((H, H), lambda b: (0, 0)),              # W2
            pl.BlockSpec((1, H), lambda b: (0, 0)),              # b2
            pl.BlockSpec((H, out_dim), lambda b: (0, 0)),        # Wf
            pl.BlockSpec((1, out_dim), lambda b: (0, 0)),        # bf
        ],
        out_specs=pl.BlockSpec((None, R, out_dim), lambda b: (b, 0, 0)),
        compiler_params=pltpu.CompilerParams(
            dimension_semantics=("parallel",)),
        cost_estimate=cost,
    )(adj_bd, x_flat, w1, b1, w2, b2, wf, bf)

    out = out.reshape(B_pad, N, out_dim)
    if B_pad != B:
        out = out[:B]
    return out


def build_normalized_adjacency(edge_index, num_nodes):
    """Dense A_hat = D^{-1/2} (A + I) D^{-1/2}, matching PyG gcn_norm."""
    src = edge_index[0]
    dst = edge_index[1]
    adj = jnp.zeros((num_nodes, num_nodes), jnp.float32)
    adj = adj.at[dst, src].add(1.0)                        # source -> target
    adj = adj + jnp.eye(num_nodes, dtype=jnp.float32)      # self loops
    deg = adj.sum(axis=1)
    dinv = jnp.where(deg > 0, 1.0 / jnp.sqrt(deg), 0.0)
    return dinv[:, None] * adj * dinv[None, :]


def init_params(key, input_dim, hidden_dim, output_dim):
    k1, k2, k3 = jax.random.split(key, 3)

    def glorot(k, shape):
        fan_in, fan_out = shape
        scale = jnp.sqrt(6.0 / (fan_in + fan_out))
        return jax.random.uniform(k, shape, jnp.float32, -scale, scale)

    # Weights stored PRE-TRANSPOSED: [in_features, out_features].
    return {
        "w1": glorot(k1, (input_dim, hidden_dim)),
        "b1": jnp.zeros((1, hidden_dim), jnp.float32),
        "w2": glorot(k2, (hidden_dim, hidden_dim)),
        "b2": jnp.zeros((1, hidden_dim), jnp.float32),
        "wf": glorot(k3, (hidden_dim, output_dim)),
        "bf": jnp.zeros((1, output_dim), jnp.float32),
    }


def reference_forward(x, adj, params):
    """Pure-JAX reference (same math, no Pallas) for correctness checking."""
    h = jnp.matmul(adj, jnp.matmul(x, params["w1"])) + params["b1"]
    h = jnp.maximum(h, 0.0)
    h = jnp.matmul(adj, jnp.matmul(h, params["w2"])) + params["b2"]
    h = jnp.maximum(h, 0.0)
    logits = jnp.matmul(h, params["wf"]) + params["bf"]
    return jax.nn.log_softmax(logits, axis=-1)


if __name__ == "__main__":
    num_graphs = 16          # 16 graphs x 16 nodes = 256 rows -> 2 grid steps of 128
    num_nodes = 16
    input_dim = 8
    hidden_dim = 32
    output_dim = 8

    key = jax.random.PRNGKey(0)
    kx, kp = jax.random.split(key)

    x = jax.random.normal(kx, (num_graphs, num_nodes, input_dim), jnp.float32)

    # Deterministic undirected ring + chord graphs (chord offset differs per graph).
    adjs = []
    for g in range(num_graphs):
        src, dst = [], []
        chord = 2 + (g % (num_nodes - 3))
        for i in range(num_nodes):
            for j in (i + 1, i + chord):
                a, b = i, j % num_nodes
                src += [a, b]
                dst += [b, a]
        edge_index = jnp.array([src, dst], dtype=jnp.int32)
        adjs.append(build_normalized_adjacency(edge_index, num_nodes))
    adj = jnp.stack(adjs, axis=0)                          # [B, N, N]

    params = init_params(kp, input_dim, hidden_dim, output_dim)
    ref = reference_forward(x, adj, params)

    # f32 path: tight check against the pure-JAX reference.
    out = gconv_model_forward(x, adj, params)
    out = jax.block_until_ready(out)
    assert out.shape == (num_graphs, num_nodes, output_dim)
    assert jnp.allclose(jnp.exp(out).sum(axis=-1), 1.0, atol=1e-4)
    assert jnp.allclose(out, ref, atol=1e-4, rtol=1e-4)

    # bf16 compute path (f32 accumulation): looser tolerance.
    out_bf16 = gconv_model_forward(x, adj, params, compute_dtype=jnp.bfloat16)
    out_bf16 = jax.block_until_ready(out_bf16)
    assert out_bf16.shape == (num_graphs, num_nodes, output_dim)
    assert jnp.allclose(jnp.exp(out_bf16).sum(axis=-1), 1.0, atol=1e-3)
    assert jnp.allclose(out_bf16, ref, atol=1e-1)

    print("KERNEL_OK")
</pallas_src>

<mosaic_0001>
module attributes {stable_mosaic.version = 11 : i64} {
  func.func @_gcn_kernel(%arg0: i32, %arg1: memref<1x128x128xf32, #tpu.memory_space<vmem>>, %arg2: memref<1x128x8xf32, #tpu.memory_space<vmem>>, %arg3: memref<8x32xf32, #tpu.memory_space<vmem>>, %arg4: memref<1x32xf32, #tpu.memory_space<vmem>>, %arg5: memref<32x32xf32, #tpu.memory_space<vmem>>, %arg6: memref<1x32xf32, #tpu.memory_space<vmem>>, %arg7: memref<32x8xf32, #tpu.memory_space<vmem>>, %arg8: memref<1x8xf32, #tpu.memory_space<vmem>>, %arg9: memref<1x128x8xf32, #tpu.memory_space<vmem>>) attributes {dimension_semantics = [#tpu.dimension_semantics<parallel>], iteration_bounds = array<i64: 2>, scalar_prefetch = 0 : i64, scratch_operands = 0 : i64, tpu.core_type = #tpu.core_type<tc>, window_params = [{transform_indices = @transform_0, window_bounds = array<i64: 1, 128, 128>}, {transform_indices = @transform_1, window_bounds = array<i64: 1, 128, 8>}, {pipeline_mode = #tpu.pipeline_mode<synchronous>, transform_indices = @transform_2, window_bounds = array<i64: 8, 32>}, {pipeline_mode = #tpu.pipeline_mode<synchronous>, transform_indices = @transform_3, window_bounds = array<i64: 1, 32>}, {pipeline_mode = #tpu.pipeline_mode<synchronous>, transform_indices = @transform_4, window_bounds = array<i64: 32, 32>}, {pipeline_mode = #tpu.pipeline_mode<synchronous>, transform_indices = @transform_5, window_bounds = array<i64: 1, 32>}, {pipeline_mode = #tpu.pipeline_mode<synchronous>, transform_indices = @transform_6, window_bounds = array<i64: 32, 8>}, {pipeline_mode = #tpu.pipeline_mode<synchronous>, transform_indices = @transform_7, window_bounds = array<i64: 1, 8>}, {transform_indices = @transform_8, window_bounds = array<i64: 1, 128, 8>}]} {
    %c0 = arith.constant 0 : index
    %c0_0 = arith.constant 0 : index
    %c0_1 = arith.constant 0 : index
    %0 = vector.load %arg1[%c0, %c0_0, %c0_1] : memref<1x128x128xf32, #tpu.memory_space<vmem>>, vector<1x128x128xf32>
    %1 = vector.shape_cast %0 : vector<1x128x128xf32> to vector<128x128xf32>
    %c0_2 = arith.constant 0 : index
    %c0_3 = arith.constant 0 : index
    %c0_4 = arith.constant 0 : index
    %2 = vector.load %arg2[%c0_2, %c0_3, %c0_4] : memref<1x128x8xf32, #tpu.memory_space<vmem>>, vector<1x128x8xf32>
    %3 = vector.shape_cast %2 : vector<1x128x8xf32> to vector<128x8xf32>
    %c0_5 = arith.constant 0 : index
    %c0_6 = arith.constant 0 : index
    %4 = vector.load %arg3[%c0_5, %c0_6] : memref<8x32xf32, #tpu.memory_space<vmem>>, vector<8x32xf32>
    %cst = arith.constant dense<0.000000e+00> : vector<128x32xf32>
    %5 = tpu.matmul %3, %4, %cst {dimension_numbers = #tpu.dot_dimension_numbers<[1], [0], [0], [1], [0, 0, 1, 1], [], []>} : vector<128x8xf32>, vector<8x32xf32>, vector<128x32xf32> -> vector<128x32xf32>
    %cst_7 = arith.constant dense<0.000000e+00> : vector<128x32xf32>
    %6 = tpu.matmul %1, %5, %cst_7 {dimension_numbers = #tpu.dot_dimension_numbers<[1], [0], [0], [1], [0, 0, 1, 1], [], []>} : vector<128x128xf32>, vector<128x32xf32>, vector<128x32xf32> -> vector<128x32xf32>
    %c0_8 = arith.constant 0 : index
    %c0_9 = arith.constant 0 : index
    %7 = vector.load %arg4[%c0_8, %c0_9] : memref<1x32xf32, #tpu.memory_space<vmem>>, vector<1x32xf32>
    %8 = vector.broadcast %7 : vector<1x32xf32> to vector<128x32xf32>
    %9 = arith.addf %6, %8 : vector<128x32xf32>
    %cst_10 = arith.constant 0.000000e+00 : f32
    %10 = vector.broadcast %cst_10 : f32 to vector<128x32xf32>
    %11 = arith.maximumf %9, %10 : vector<128x32xf32>
    %c0_11 = arith.constant 0 : index
    %c0_12 = arith.constant 0 : index
    %12 = vector.load %arg5[%c0_11, %c0_12] : memref<32x32xf32, #tpu.memory_space<vmem>>, vector<32x32xf32>
    %cst_13 = arith.constant dense<0.000000e+00> : vector<128x32xf32>
    %13 = tpu.matmul %11, %12, %cst_13 {dimension_numbers = #tpu.dot_dimension_numbers<[1], [0], [0], [1], [0, 0, 1, 1], [], []>} : vector<128x32xf32>, vector<32x32xf32>, vector<128x32xf32> -> vector<128x32xf32>
    %cst_14 = arith.constant dense<0.000000e+00> : vector<128x32xf32>
    %14 = tpu.matmul %1, %13, %cst_14 {dimension_numbers = #tpu.dot_dimension_numbers<[1], [0], [0], [1], [0, 0, 1, 1], [], []>} : vector<128x128xf32>, vector<128x32xf32>, vector<128x32xf32> -> vector<128x32xf32>
    %c0_15 = arith.constant 0 : index
    %c0_16 = arith.constant 0 : index
    %15 = vector.load %arg6[%c0_15, %c0_16] : memref<1x32xf32, #tpu.memory_space<vmem>>, vector<1x32xf32>
    %16 = vector.broadcast %15 : vector<1x32xf32> to vector<128x32xf32>
    %17 = arith.addf %14, %16 : vector<128x32xf32>
    %cst_17 = arith.constant 0.000000e+00 : f32
    %18 = vector.broadcast %cst_17 : f32 to vector<128x32xf32>
    %19 = arith.maximumf %17, %18 : vector<128x32xf32>
    %c0_18 = arith.constant 0 : index
    %c0_19 = arith.constant 0 : index
    %20 = vector.load %arg7[%c0_18, %c0_19] : memref<32x8xf32, #tpu.memory_space<vmem>>, vector<32x8xf32>
    %cst_20 = arith.constant dense<0.000000e+00> : vector<128x8xf32>
    %21 = tpu.matmul %19, %20, %cst_20 {dimension_numbers = #tpu.dot_dimension_numbers<[1], [0], [0], [1], [0, 0, 1, 1], [], []>} : vector<128x32xf32>, vector<32x8xf32>, vector<128x8xf32> -> vector<128x8xf32>
    %c0_21 = arith.constant 0 : index
    %c0_22 = arith.constant 0 : index
    %22 = vector.load %arg8[%c0_21, %c0_22] : memref<1x8xf32, #tpu.memory_space<vmem>>, vector<1x8xf32>
    %23 = vector.broadcast %22 : vector<1x8xf32> to vector<128x8xf32>
    %24 = arith.addf %21, %23 : vector<128x8xf32>
    %cst_23 = arith.constant dense<0xFF800000> : vector<128xf32>
    %25 = vector.multi_reduction <maximumf>, %24, %cst_23 [1] : vector<128x8xf32> to vector<128xf32>
    %26 = vector.shape_cast %25 : vector<128xf32> to vector<128x1xf32>
    %27 = vector.broadcast %26 : vector<128x1xf32> to vector<128x8xf32>
    %28 = arith.subf %24, %27 : vector<128x8xf32>
    %29 = math.exp %28 : vector<128x8xf32>
    %cst_24 = arith.constant dense<0.000000e+00> : vector<128xf32>
    %30 = vector.multi_reduction <add>, %29, %cst_24 [1] : vector<128x8xf32> to vector<128xf32>
    %31 = vector.shape_cast %30 : vector<128xf32> to vector<128x1xf32>
    %32 = math.log %31 : vector<128x1xf32>
    %33 = vector.broadcast %32 : vector<128x1xf32> to vector<128x8xf32>
    %34 = arith.subf %28, %33 : vector<128x8xf32>
    %c0_25 = arith.constant 0 : index
    %c0_26 = arith.constant 0 : index
    %c0_27 = arith.constant 0 : index
    %35 = vector.load %arg9[%c0_25, %c0_26, %c0_27] : memref<1x128x8xf32, #tpu.memory_space<vmem>>, vector<1x128x8xf32>
    %36 = vector.shape_cast %35 : vector<1x128x8xf32> to vector<128x8xf32>
    %37 = vector.shape_cast %34 : vector<128x8xf32> to vector<1x128x8xf32>
    tpu.vector_store %arg9[%c0_25, %c0_26, %c0_27], %37 {strides = array<i32>} : memref<1x128x8xf32, #tpu.memory_space<vmem>>, vector<1x128x8xf32>,
    return
  }
  func.func @transform_0(%arg0: i32) -> (i32, i32, i32) {
    %c0_i32 = arith.constant 0 : i32
    %c0_i32_0 = arith.constant 0 : i32
    %c0_i32_1 = arith.constant 0 : i32
    return %arg0, %c0_i32, %c0_i32_0 : i32, i32, i32
  }
  func.func @transform_1(%arg0: i32) -> (i32, i32, i32) {
    %c0_i32 = arith.constant 0 : i32
    %c0_i32_0 = arith.constant 0 : i32
    %c0_i32_1 = arith.constant 0 : i32
    return %arg0, %c0_i32, %c0_i32_0 : i32, i32, i32
  }
  func.func @transform_2(%arg0: i32) -> (i32, i32) {
    %c0_i32 = arith.constant 0 : i32
    %c0_i32_0 = arith.constant 0 : i32
    %c0_i32_1 = arith.constant 0 : i32
    return %c0_i32, %c0_i32_0 : i32, i32
  }
  func.func @transform_3(%arg0: i32) -> (i32, i32) {
    %c0_i32 = arith.constant 0 : i32
    %c0_i32_0 = arith.constant 0 : i32
    %c0_i32_1 = arith.constant 0 : i32
    return %c0_i32, %c0_i32_0 : i32, i32
  }
  func.func @transform_4(%arg0: i32) -> (i32, i32) {
    %c0_i32 = arith.constant 0 : i32
    %c0_i32_0 = arith.constant 0 : i32
    %c0_i32_1 = arith.constant 0 : i32
    return %c0_i32, %c0_i32_0 : i32, i32
  }
  func.func @transform_5(%arg0: i32) -> (i32, i32) {
    %c0_i32 = arith.constant 0 : i32
    %c0_i32_0 = arith.constant 0 : i32
    %c0_i32_1 = arith.constant 0 : i32
    return %c0_i32, %c0_i32_0 : i32, i32
  }
  func.func @transform_6(%arg0: i32) -> (i32, i32) {
    %c0_i32 = arith.constant 0 : i32
    %c0_i32_0 = arith.constant 0 : i32
    %c0_i32_1 = arith.constant 0 : i32
    return %c0_i32, %c0_i32_0 : i32, i32
  }
  func.func @transform_7(%arg0: i32) -> (i32, i32) {
    %c0_i32 = arith.constant 0 : i32
    %c0_i32_0 = arith.constant 0 : i32
    %c0_i32_1 = arith.constant 0 : i32
    return %c0_i32, %c0_i32_0 : i32, i32
  }
  func.func @transform_8(%arg0: i32) -> (i32, i32, i32) {
    %c0_i32 = arith.constant 0 : i32
    %c0_i32_0 = arith.constant 0 : i32
    %c0_i32_1 = arith.constant 0 : i32
    return %arg0, %c0_i32, %c0_i32_0 : i32, i32, i32
  }
}

</mosaic_0001>

<bundles_post_ra>
// kernel: tpu_custom_call.1
= control target key start
LH: loop header
LB: loop body
LE: loop exit
PB: predicated region body
PF: predicated region fallthrough
CT: control target
= control target key end

     0   :  { %13 = vsyncpa [#allocation3], 0  ;;  %s1427_s27 = smov 0   ;;  %s1862_s0 = inlined_call_operand.vmem [shape: f32[2,128,128], index: 0, kind: input, shape index: {}]   ;;  %s1863_s1 = inlined_call_operand.vmem [shape: f32[2,128,8], index: 1, kind: input, shape index: {}]   ;;  %s1864_s2 = inlined_call_operand.vmem [shape: f32[8,32], index: 2, kind: input, shape index: {}]   ;;  %s1865_s3 = inlined_call_operand.hbm [shape: f32[1,32], index: 3, kind: input, shape index: {}]   ;;  %s1866_s4 = inlined_call_operand.vmem [shape: f32[32,32], index: 4, kind: input, shape index: {}]   ;;  %s1867_s5 = inlined_call_operand.vmem [shape: f32[1,32], index: 5, kind: input, shape index: {}]   ;;  %s1868_s6 = inlined_call_operand.vmem [shape: f32[32,8], index: 6, kind: input, shape index: {}]   ;;  %s1869_s7 = inlined_call_operand.vmem [shape: f32[1,8], index: 7, kind: input, shape index: {}]   ;;  %s1870_s8 = inlined_call_operand.vmem [shape: f32[2,128,8], index: 8, kind: output, shape index: {}]  }
   0x1 LB: > { %s1184_s28 = sadd.s32 4294967295, %s1379_s27   ;;  %p1186_p0 = scmp.ge.s32.totalorder %s1379_s27, 1  ;;  %s1379_s27 = sphi %s1427_s27, %s19_s27  }
   0x2   : > { %p228_p1 = scmp.lt.s32.totalorder %s1379_s27, 3  ;;  %s243_s9 = sshll.u32 %s1865_s3, 4  ;;  %s244_s9 = int_to_ptr.hbm [resolvable:$true] %s243_s9 }
   0x3   : > { %p1261_p3 = scmp.eq.s32.totalorder %s1184_s28, 0  ;;  %s1381_s10 = smov [#allocation2]  }
   0x4   : > { %p229_p2 = pnand %p1186_p0, %p228_p1  ;;  %s245_s11 = sshll.u32 %s1381_s10, 4  ;;  %s246_s11 = int_to_ptr.vmem [resolvable:$true] %s245_s11 }
   0x6   : > { %p1257_p4 = pneg %p229_p2  ;;  %286 = sbr.rel (%p229_p2) target bundleno = 1259 (0x4eb), region = 52 }
   0x8   : > { %p1258_p5 = pnand %p1261_p3, %p1257_p4 }
   0xa   : > { %1260 = dma.hbm_to_vmem [thread:$0]  (!%p1258_p5), %s244_s9, 16, %s246_s11, [#allocation3]  }
   0xb   : > { %1374 = dma.done.wait (%p1261_p3), [#allocation3], 16  }
   0xc   : > { %1376 = vsyncadd (%p1261_p3), [#allocation3], 4294967280  ;;  %p326_p6 = scmp.lt.s32.totalorder %s1184_s28, 1  ;;  %vm374_vm0 = vcmask 64512   ;;  %v373_v0 = vld [vmem:[%s1864_s2] sm:$0xff]  ;;  %v576_v42 = vld [vmem:[%s1866_s4 + $0x18] sm:$0xff] }
   0xd   : > { %1252 = vmatpush.msra.mxu3 %v373_v0  ;;  %1251 = vmatpush.msra.mxu2 %v373_v0  ;;  %v575_v44 = vld [vmem:[%s1866_s4 + $0x10] sm:$0xff]  ;;  %v574_v46 = vld [vmem:[%s1866_s4 + $0x8] sm:$0xff]  ;;  %v573_v48 = vld [vmem:[%s1866_s4] sm:$0xff]  ;;  %vm577_vm1 = vcmask 261120  }
   0xe   : > { %s1872_s28 = smov (!%p326_p6, %s1184_s28), 1  ;;  %1250 = vmatpush.msra.mxu1 %v373_v0  ;;  %438 = vmatpush.msra.mxu0 %v373_v0  ;;  %v1563_v53 = vld [vmem:[#allocation2] ss:$0 sm:$0xff] }
   0xf   : > { %s1438_s12 = sshll.u32 %s1872_s28, 7  ;;  %638 = vmatpush.msrb.mxu2 %v576_v42 }
  0x10   : > { %s1444_s15 = scalar_lea.vmem %s1863_s1, %s1438_s12  ;;  %s1485_s20 = scalar_lea.vmem %s1862_s0, %s1438_s12 }
  0x11   : > { %v369_v1 = vld [vmem:[%s1444_s15 + $0x60] sm:$0xff]  ;;  %v370_v5 = vld [vmem:[%s1444_s15 + $0x68] sm:$0xff]  ;;  %v371_v9 = vld [vmem:[%s1444_s15 + $0x70] sm:$0xff]  ;;  %639 = vmatpush.msrb.mxu2 %v575_v44  ;;  %s1809_s23 = scalar_lea.vmem %s1870_s8, %s1438_s12 }
  0x12   : > { %v365_v2 = vld [vmem:[%s1444_s15 + $0x40] sm:$0xff]  ;;  %1209 = vmatmul.msk.f32.vlgmr.msra.gmra.mxu3 %vm374_vm0, %v369_v1  ;;  %v366_v6 = vld [vmem:[%s1444_s15 + $0x48] sm:$0xff]  ;;  %v367_v10 = vld [vmem:[%s1444_s15 + $0x50] sm:$0xff] }
  0x13   : > { %1205 = vmatmul.msk.f32.vlgmr.msra.gmra.mxu2 %vm374_vm0, %v365_v2  ;;  %v361_v3 = vld [vmem:[%s1444_s15 + $0x20] sm:$0xff]  ;;  %v362_v7 = vld [vmem:[%s1444_s15 + $0x28] sm:$0xff]  ;;  %v363_v11 = vld [vmem:[%s1444_s15 + $0x30] sm:$0xff] }
  0x14   : > { %v357_v4 = vld [vmem:[%s1444_s15] sm:$0xff]  ;;  %1201 = vmatmul.msk.f32.vlgmr.msra.gmra.mxu1 %vm374_vm0, %v361_v3  ;;  %v358_v8 = vld [vmem:[%s1444_s15 + $0x8] sm:$0xff]  ;;  %v359_v12 = vld [vmem:[%s1444_s15 + $0x10] sm:$0xff]  ;;  %640 = vmatpush.msrb.mxu2 %v574_v46 }
  0x15   : > { %1197 = vmatmul.msk.f32.vlgmr.msra.gmra.mxu0 %vm374_vm0, %v357_v4  ;;  %v372_v13 = vld [vmem:[%s1444_s15 + $0x78] sm:$0xff]  ;;  %v1488_v33 = vld [vmem:[%s1485_s20] sm:$0xff]  ;;  %v1492_v34 = vld [vmem:[%s1485_s20 + $0x8] sm:$0xff] }
  0x16   : > { %v368_v14 = vld [vmem:[%s1444_s15 + $0x58] sm:$0xff]  ;;  %v1496_v35 = vld [vmem:[%s1485_s20 + $0x10] sm:$0xff]  ;;  %v1504_v37 = vld [vmem:[%s1485_s20 + $0x20] sm:$0xff]  ;;  %641 = vmatpush.msrb.mxu2 %v573_v48 }
  0x17   : > { %v364_v15 = vld [vmem:[%s1444_s15 + $0x38] sm:$0xff]  ;;  %v1508_v38 = vld [vmem:[%s1485_s20 + $0x28] sm:$0xff]  ;;  %v1512_v39 = vld [vmem:[%s1485_s20 + $0x30] sm:$0xff] }
  0x18   : > { %v360_v16 = vld [vmem:[%s1444_s15 + $0x18] sm:$0xff]  ;;  %v1520_v41 = vld [vmem:[%s1485_s20 + $0x40] sm:$0xff]  ;;  %v1527_v43 = vld [vmem:[%s1485_s20 + $0x48] sm:$0xff] }
  0x19   : > { %v1500_v36 = vld [vmem:[%s1485_s20 + $0x18] sm:$0xff]  ;;  %v1534_v45 = vld [vmem:[%s1485_s20 + $0x50] sm:$0xff]  ;;  %v1548_v49 = vld [vmem:[%s1485_s20 + $0x60] sm:$0xff] }
  0x1a   : > { %1210 = vmatmul.msk.f32.gmra.mxu3 %vm374_vm0, %v370_v5  ;;  %v1516_v40 = vld [vmem:[%s1485_s20 + $0x38] sm:$0xff]  ;;  %v1552_v50 = vld [vmem:[%s1485_s20 + $0x68] sm:$0xff]  ;;  %v1556_v51 = vld [vmem:[%s1485_s20 + $0x70] sm:$0xff] }
  0x1b   : > { %1206 = vmatmul.msk.f32.gmra.mxu2 %vm374_vm0, %v366_v6  ;;  %v1541_v47 = vld [vmem:[%s1485_s20 + $0x58] sm:$0xff] }
  0x1c   : > { %1202 = vmatmul.msk.f32.gmra.mxu1 %vm374_vm0, %v362_v7  ;;  %v1560_v52 = vld [vmem:[%s1485_s20 + $0x78] sm:$0xff] }
  0x1d   : > { %1198 = vmatmul.msk.f32.gmra.mxu0 %vm374_vm0, %v358_v8 }
  0x22   : > { %1211 = vmatmul.msk.f32.gmra.mxu3 %vm374_vm0, %v371_v9 }
  0x23   : > { %1207 = vmatmul.msk.f32.gmra.mxu2 %vm374_vm0, %v367_v10 }
  0x24   : > { %1203 = vmatmul.msk.f32.gmra.mxu1 %vm374_vm0, %v363_v11 }
  0x25   : > { %1199 = vmatmul.msk.f32.gmra.mxu0 %vm374_vm0, %v359_v12 }
  0x2a   : > { %1212 = vmatmul.msk.f32.gmra.mxu3 %vm374_vm0, %v372_v13 }
  0x2b   : > { %1208 = vmatmul.msk.f32.gmra.mxu2 %vm374_vm0, %v368_v14 }
  0x2c   : > { %1204 = vmatmul.msk.f32.gmra.mxu1 %vm374_vm0, %v364_v15 }
  0x2d   : > { %1200 = vmatmul.msk.f32.gmra.mxu0 %vm374_vm0, %v360_v16 }
  0x91   : > { %v452_v20 = vpop.f32.mrf.mxu1 }
  0x92   : > { %v440_v23 = vpop.f32.mrf.mxu0 }
  0x95   : > { %v476_v17 = vpop.f32.mrf.mxu3 }
  0x96   : > { %v464_v18 = vpop.f32.mrf.mxu2 }
  0x99   : > { %v455_v24 = vpop.f32.mrf.mxu1 }
  0x9a   : > { %v443_v27 = vpop.f32.mrf.mxu0 }
  0x9d   : > { %v479_v19 = vpop.f32.mrf.mxu3 }
  0x9e   : > { %v467_v21 = vpop.f32.mrf.mxu2 }
  0xa1   : > { %v458_v28 = vpop.f32.mrf.mxu1 }
  0xa2   : > { %v446_v30 = vpop.f32.mrf.mxu0 }
  0xa5   : > { %v482_v22 = vpop.f32.mrf.mxu3 }
  0xa6   : > { %v470_v25 = vpop.f32.mrf.mxu2 }
  0xa9   : > { %v461_v31 = vpop.f32.mrf.mxu1 }
  0xaa   : > { %v449_v32 = vpop.f32.mrf.mxu0 }
  0xad   : > { %v485_v26 = vpop.f32.mrf.mxu3 }
  0xae   : > { %492 = vmatpush.msrb.mxu1 %v485_v26  ;;  %v473_v29 = vpop.f32.mrf.mxu2 }
  0xb0   : > { %493 = vmatpush.msrb.mxu1 %v482_v22 }
  0xb2   : > { %494 = vmatpush.msrb.mxu1 %v479_v19 }
  0xb4   : > { %495 = vmatpush.msrb.mxu1 %v476_v17 }
  0xb6   : > { %496 = vmatpush.msrb.mxu1 %v473_v29 }
  0xb8   : > { %497 = vmatpush.msrb.mxu1 %v470_v25 }
  0xba   : > { %498 = vmatpush.msrb.mxu1 %v467_v21 }
  0xbc   : > { %499 = vmatpush.msrb.mxu1 %v464_v18 }
  0xbe   : > { %500 = vmatpush.msrb.mxu1 %v461_v31 }
  0xc0   : > { %501 = vmatpush.msrb.mxu1 %v458_v28 }
  0xc2   : > { %502 = vmatpush.msrb.mxu1 %v455_v24 }
  0xc4   : > { %503 = vmatpush.msrb.mxu1 %v452_v20 }
  0xc6   : > { %504 = vmatpush.msrb.mxu1 %v449_v32 }
  0xc8   : > { %505 = vmatpush.msrb.mxu1 %v446_v30 }
  0xca   : > { %506 = vmatpush.msrb.mxu1 %v443_v27 }
  0xcc   : > { %507 = vmatpush.msrb.mxu1 %v440_v23 }
  0xcd   : > { %508 = vmatmul.f32.vlgmr.msrb.gmra.mxu1 %v1488_v33 }
  0xd5   : > { %511 = vmatmul.f32.gmra.mxu1 %v1492_v34 }
  0xdd   : > { %514 = vmatmul.f32.gmra.mxu1 %v1496_v35 }
  0xe5   : > { %517 = vmatmul.f32.gmra.mxu1 %v1500_v36 }
  0xed   : > { %520 = vmatmul.f32.gmra.mxu1 %v1504_v37 }
  0xf5   : > { %523 = vmatmul.f32.gmra.mxu1 %v1508_v38 }
  0xfd   : > { %526 = vmatmul.f32.gmra.mxu1 %v1512_v39 }
 0x105   : > { %529 = vmatmul.f32.gmra.mxu1 %v1516_v40 }
 0x10d   : > { %532 = vmatmul.f32.gmra.mxu1 %v1520_v41 }
 0x115   : > { %535 = vmatmul.f32.gmra.mxu1 %v1527_v43 }
 0x11d   : > { %538 = vmatmul.f32.gmra.mxu1 %v1534_v45 }
 0x125   : > { %541 = vmatmul.f32.gmra.mxu1 %v1541_v47 }
 0x12d   : > { %544 = vmatmul.f32.gmra.mxu1 %v1548_v49 }
 0x135   : > { %547 = vmatmul.f32.gmra.mxu1 %v1552_v50 }
 0x13d   : > { %550 = vmatmul.f32.gmra.mxu1 %v1556_v51 }
 0x145   : > { %553 = vmatmul.f32.gmra.mxu1 %v1560_v52 }
 0x14a   : > { %v509_v54 = vpop.f32.mrf.mxu1 }
 0x14b   : > { %v510_v55 = vadd.f32 %v1563_v53, %v509_v54 }
 0x14d   : > { %v557_v56 = vmax.f32 %v510_v55, 0.0 }
 0x14f   : > { %1213 = vmatmul.msk.f32.vlgmr.msrb.gmra.mxu2 %vm577_vm1, %v557_v56 }
 0x152   : > { %v512_v57 = vpop.f32.mrf.mxu1 }
 0x153   : > { %v513_v58 = vadd.f32 %v1563_v53, %v512_v57 }
 0x155   : > { %v558_v59 = vmax.f32 %v513_v58, 0.0 }
 0x157   : > { %1214 = vmatmul.msk.f32.gmra.mxu2 %vm577_vm1, %v558_v59 }
 0x15a   : > { %v515_v60 = vpop.f32.mrf.mxu1 }
 0x15b   : > { %v516_v61 = vadd.f32 %v1563_v53, %v515_v60 }
 0x15d   : > { %v559_v62 = vmax.f32 %v516_v61, 0.0 }
 0x15f   : > { %1215 = vmatmul.msk.f32.gmra.mxu2 %vm577_vm1, %v559_v62 }
 0x162   : > { %v518_v63 = vpop.f32.mrf.mxu1 }
 0x163   : > { %v519_v0 = vadd.f32 %v1563_v53, %v518_v63 }
 0x165   : > { %v560_v1 = vmax.f32 %v519_v0, 0.0 }
 0x167   : > { %1216 = vmatmul.msk.f32.gmra.mxu2 %vm577_vm1, %v560_v1 }
 0x16a   : > { %v521_v2 = vpop.f32.mrf.mxu1 }
 0x16b   : > { %v522_v3 = vadd.f32 %v1563_v53, %v521_v2 }
 0x16d   : > { %v561_v4 = vmax.f32 %v522_v3, 0.0 }
 0x16f   : > { %1217 = vmatmul.msk.f32.gmra.mxu2 %vm577_vm1, %v561_v4 }
 0x172   : > { %v524_v5 = vpop.f32.mrf.mxu1 }
 0x173   : > { %v525_v6 = vadd.f32 %v1563_v53, %v524_v5 }
 0x175   : > { %v562_v7 = vmax.f32 %v525_v6, 0.0 }
 0x177   : > { %1218 = vmatmul.msk.f32.gmra.mxu2 %vm577_vm1, %v562_v7 }
 0x17a   : > { %v527_v8 = vpop.f32.mrf.mxu1 }
 0x17b   : > { %v528_v9 = vadd.f32 %v1563_v53, %v527_v8 }
 0x17d   : > { %v563_v10 = vmax.f32 %v528_v9, 0.0 }
 0x17f   : > { %1219 = vmatmul.msk.f32.gmra.mxu2 %vm577_vm1, %v563_v10 }
 0x182   : > { %v530_v11 = vpop.f32.mrf.mxu1 }
 0x183   : > { %v531_v12 = vadd.f32 %v1563_v53, %v530_v11 }
 0x185   : > { %v564_v13 = vmax.f32 %v531_v12, 0.0 }
 0x187   : > { %1220 = vmatmul.msk.f32.gmra.mxu2 %vm577_vm1, %v564_v13 }
 0x18a   : > { %v533_v14 = vpop.f32.mrf.mxu1 }
 0x18b   : > { %v534_v15 = vadd.f32 %v1563_v53, %v533_v14 }
 0x18d   : > { %v565_v16 = vmax.f32 %v534_v15, 0.0 }
 0x18f   : > { %1221 = vmatmul.msk.f32.gmra.mxu2 %vm577_vm1, %v565_v16 }
 0x192   : > { %v536_v17 = vpop.f32.mrf.mxu1 }
 0x193   : > { %v537_v18 = vadd.f32 %v1563_v53, %v536_v17 }
 0x195   : > { %v566_v19 = vmax.f32 %v537_v18, 0.0 }
 0x197   : > { %1222 = vmatmul.msk.f32.gmra.mxu2 %vm577_vm1, %v566_v19 }
 0x19a   : > { %v539_v20 = vpop.f32.mrf.mxu1 }
 0x19b   : > { %v540_v21 = vadd.f32 %v1563_v53, %v539_v20 }
 0x19d   : > { %v567_v22 = vmax.f32 %v540_v21, 0.0 }
 0x19f   : > { %1223 = vmatmul.msk.f32.gmra.mxu2 %vm577_vm1, %v567_v22 }
 0x1a2   : > { %v542_v23 = vpop.f32.mrf.mxu1 }
 0x1a3   : > { %v543_v24 = vadd.f32 %v1563_v53, %v542_v23 }
 0x1a5   : > { %v568_v25 = vmax.f32 %v543_v24, 0.0 }
 0x1a7   : > { %1224 = vmatmul.msk.f32.gmra.mxu2 %vm577_vm1, %v568_v25 }
 0x1aa   : > { %v545_v26 = vpop.f32.mrf.mxu1 }
 0x1ab   : > { %v546_v27 = vadd.f32 %v1563_v53, %v545_v26 }
 0x1ad   : > { %v569_v28 = vmax.f32 %v546_v27, 0.0 }
 0x1af   : > { %1225 = vmatmul.msk.f32.gmra.mxu2 %vm577_vm1, %v569_v28 }
 0x1b2   : > { %v548_v29 = vpop.f32.mrf.mxu1 }
 0x1b3   : > { %v549_v30 = vadd.f32 %v1563_v53, %v548_v29 }
 0x1b5   : > { %v570_v31 = vmax.f32 %v549_v30, 0.0 }
 0x1b7   : > { %1226 = vmatmul.msk.f32.gmra.mxu2 %vm577_vm1, %v570_v31 }
 0x1ba   : > { %v551_v32 = vpop.f32.mrf.mxu1 }
 0x1bb   : > { %v552_v42 = vadd.f32 %v1563_v53, %v551_v32 }
 0x1bd   : > { %v571_v44 = vmax.f32 %v552_v42, 0.0 }
 0x1bf   : > { %1227 = vmatmul.msk.f32.gmra.mxu2 %vm577_vm1, %v571_v44 }
 0x1c2   : > { %v554_v46 = vpop.f32.mrf.mxu1 }
 0x1c3   : > { %v555_v48 = vadd.f32 %v1563_v53, %v554_v46 }
 0x1c5   : > { %v572_v54 = vmax.f32 %v555_v48, 0.0 }
 0x1c7   : > { %1228 = vmatmul.msk.f32.gmra.mxu2 %vm577_vm1, %v572_v54 }
 0x1d2   : > { %v643_v55 = vpop.f32.mrf.mxu2 }
 0x1da   : > { %v646_v56 = vpop.f32.mrf.mxu2 }
 0x1e2   : > { %v649_v57 = vpop.f32.mrf.mxu2 }
 0x1ea   : > { %v652_v58 = vpop.f32.mrf.mxu2 }
 0x1f2   : > { %v655_v59 = vpop.f32.mrf.mxu2 }
 0x1fa   : > { %v658_v60 = vpop.f32.mrf.mxu2 }
 0x202   : > { %v661_v61 = vpop.f32.mrf.mxu2 }
 0x20a   : > { %v664_v62 = vpop.f32.mrf.mxu2 }
 0x212   : > { %v667_v63 = vpop.f32.mrf.mxu2 }
 0x21a   : > { %v670_v0 = vpop.f32.mrf.mxu2 }
 0x222   : > { %v673_v1 = vpop.f32.mrf.mxu2 }
 0x22a   : > { %v676_v2 = vpop.f32.mrf.mxu2 }
 0x232   : > { %v679_v3 = vpop.f32.mrf.mxu2 }
 0x23a   : > { %v682_v4 = vpop.f32.mrf.mxu2 }
 0x242   : > { %v685_v5 = vpop.f32.mrf.mxu2 }
 0x24a   : > { %v688_v6 = vpop.f32.mrf.mxu2 }
 0x24b   : > { %695 = vmatpush.msrb.mxu3 %v688_v6 }
 0x24d   : > { %696 = vmatpush.msrb.mxu3 %v685_v5 }
 0x24f   : > { %697 = vmatpush.msrb.mxu3 %v682_v4 }
 0x251   : > { %698 = vmatpush.msrb.mxu3 %v679_v3 }
 0x253   : > { %699 = vmatpush.msrb.mxu3 %v676_v2 }
 0x255   : > { %700 = vmatpush.msrb.mxu3 %v673_v1 }
 0x257   : > { %701 = vmatpush.msrb.mxu3 %v670_v0 }
 0x259   : > { %702 = vmatpush.msrb.mxu3 %v667_v63 }
 0x25b   : > { %703 = vmatpush.msrb.mxu3 %v664_v62 }
 0x25d   : > { %704 = vmatpush.msrb.mxu3 %v661_v61 }
 0x25f   : > { %705 = vmatpush.msrb.mxu3 %v658_v60  ;;  %v1647_v60 = vld [vmem:[%s1869_s7] ss:$0 sm:$0xff] }
 0x261   : > { %706 = vmatpush.msrb.mxu3 %v655_v59 }
 0x263   : > { %707 = vmatpush.msrb.mxu3 %v652_v58 }
 0x265   : > { %708 = vmatpush.msrb.mxu3 %v649_v57 }
 0x267   : > { %709 = vmatpush.msrb.mxu3 %v646_v56 }
 0x269   : > { %710 = vmatpush.msrb.mxu3 %v643_v55 }
 0x26a   : > { %711 = vmatmul.f32.vlgmr.msrb.gmra.mxu3 %v1488_v33  ;;  %v779_v33 = vld [vmem:[%s1868_s6 + $0x18] sm:$0xff] }
 0x26b   : > { %844 = vmatpush.msrb.mxu0 %v779_v33 }
 0x272   : > { %714 = vmatmul.f32.gmra.mxu3 %v1492_v34  ;;  %v778_v34 = vld [vmem:[%s1868_s6 + $0x10] sm:$0xff] }
 0x273   : > { %845 = vmatpush.msrb.mxu0 %v778_v34 }
 0x27a   : > { %717 = vmatmul.f32.gmra.mxu3 %v1496_v35  ;;  %v777_v35 = vld [vmem:[%s1868_s6 + $0x8] sm:$0xff] }
 0x27b   : > { %846 = vmatpush.msrb.mxu0 %v777_v35 }
 0x282   : > { %720 = vmatmul.f32.gmra.mxu3 %v1500_v36  ;;  %v776_v36 = vld [vmem:[%s1868_s6] sm:$0xff] }
 0x283   : > { %847 = vmatpush.msrb.mxu0 %v776_v36 }
 0x28a   : > { %723 = vmatmul.f32.gmra.mxu3 %v1504_v37  ;;  %v1273_v37 = vld [vmem:[%s1867_s5] ss:$0 sm:$0xff] }
 0x292   : > { %726 = vmatmul.f32.gmra.mxu3 %v1508_v38 }
 0x29a   : > { %729 = vmatmul.f32.gmra.mxu3 %v1512_v39 }
 0x2a2   : > { %732 = vmatmul.f32.gmra.mxu3 %v1516_v40 }
 0x2aa   : > { %735 = vmatmul.f32.gmra.mxu3 %v1520_v41 }
 0x2b2   : > { %738 = vmatmul.f32.gmra.mxu3 %v1527_v43 }
 0x2ba   : > { %741 = vmatmul.f32.gmra.mxu3 %v1534_v45 }
 0x2c2   : > { %744 = vmatmul.f32.gmra.mxu3 %v1541_v47 }
 0x2ca   : > { %747 = vmatmul.f32.gmra.mxu3 %v1548_v49 }
 0x2d2   : > { %750 = vmatmul.f32.gmra.mxu3 %v1552_v50 }
 0x2da   : > { %753 = vmatmul.f32.gmra.mxu3 %v1556_v51 }
 0x2e2   : > { %756 = vmatmul.f32.gmra.mxu3 %v1560_v52 }
 0x2ed   : > { %v712_v38 = vpop.f32.mrf.mxu3 }
 0x2ee   : > { %v713_v39 = vadd.f32 %v1273_v37, %v712_v38 }
 0x2f0   : > { %v760_v40 = vmax.f32 %v713_v39, 0.0 }
 0x2f2   : > { %1229 = vmatmul.msk.f32.vlgmr.msrb.gmra.mxu0 %vm577_vm1, %v760_v40 }
 0x2f5   : > { %v715_v41 = vpop.f32.mrf.mxu3 }
 0x2f6   : > { %v716_v43 = vadd.f32 %v1273_v37, %v715_v41 }
 0x2f8   : > { %v761_v45 = vmax.f32 %v716_v43, 0.0 }
 0x2fa   : > { %1230 = vmatmul.msk.f32.gmra.mxu0 %vm577_vm1, %v761_v45 }
 0x2fd   : > { %v718_v47 = vpop.f32.mrf.mxu3 }
 0x2fe   : > { %v719_v49 = vadd.f32 %v1273_v37, %v718_v47 }
 0x300   : > { %v762_v50 = vmax.f32 %v719_v49, 0.0 }
 0x302   : > { %1231 = vmatmul.msk.f32.gmra.mxu0 %vm577_vm1, %v762_v50 }
 0x305   : > { %v721_v51 = vpop.f32.mrf.mxu3 }
 0x306   : > { %v722_v52 = vadd.f32 %v1273_v37, %v721_v51 }
 0x308   : > { %v763_v53 = vmax.f32 %v722_v52, 0.0 }
 0x30a   : > { %1232 = vmatmul.msk.f32.gmra.mxu0 %vm577_vm1, %v763_v53 }
 0x30d   : > { %v724_v7 = vpop.f32.mrf.mxu3 }
 0x30e   : > { %v725_v8 = vadd.f32 %v1273_v37, %v724_v7 }
 0x310   : > { %v764_v9 = vmax.f32 %v725_v8, 0.0 }
 0x312   : > { %1233 = vmatmul.msk.f32.gmra.mxu0 %vm577_vm1, %v764_v9 }
 0x315   : > { %v727_v10 = vpop.f32.mrf.mxu3 }
 0x316   : > { %v728_v11 = vadd.f32 %v1273_v37, %v727_v10 }
 0x318   : > { %v765_v12 = vmax.f32 %v728_v11, 0.0 }
 0x31a   : > { %1234 = vmatmul.msk.f32.gmra.mxu0 %vm577_vm1, %v765_v12 }
 0x31d   : > { %v730_v13 = vpop.f32.mrf.mxu3 }
 0x31e   : > { %v731_v14 = vadd.f32 %v1273_v37, %v730_v13 }
 0x320   : > { %v766_v15 = vmax.f32 %v731_v14, 0.0 }
 0x322   : > { %1235 = vmatmul.msk.f32.gmra.mxu0 %vm577_vm1, %v766_v15 }
 0x325   : > { %v733_v16 = vpop.f32.mrf.mxu3 }
 0x326   : > { %v734_v17 = vadd.f32 %v1273_v37, %v733_v16 }
 0x328   : > { %v767_v18 = vmax.f32 %v734_v17, 0.0 }
 0x32a   : > { %1236 = vmatmul.msk.f32.gmra.mxu0 %vm577_vm1, %v767_v18 }
 0x32d   : > { %v736_v19 = vpop.f32.mrf.mxu3 }
 0x32e   : > { %v737_v20 = vadd.f32 %v1273_v37, %v736_v19 }
 0x330   : > { %v768_v21 = vmax.f32 %v737_v20, 0.0 }
 0x332   : > { %1237 = vmatmul.msk.f32.gmra.mxu0 %vm577_vm1, %v768_v21 }
 0x335   : > { %v739_v22 = vpop.f32.mrf.mxu3 }
 0x336   : > { %v740_v23 = vadd.f32 %v1273_v37, %v739_v22 }
 0x338   : > { %v769_v24 = vmax.f32 %v740_v23, 0.0 }
 0x33a   : > { %1238 = vmatmul.msk.f32.gmra.mxu0 %vm577_vm1, %v769_v24 }
 0x33d   : > { %v742_v25 = vpop.f32.mrf.mxu3 }
 0x33e   : > { %v743_v26 = vadd.f32 %v1273_v37, %v742_v25 }
 0x340   : > { %v770_v27 = vmax.f32 %v743_v26, 0.0 }
 0x342   : > { %1239 = vmatmul.msk.f32.gmra.mxu0 %vm577_vm1, %v770_v27 }
 0x345   : > { %v745_v28 = vpop.f32.mrf.mxu3 }
 0x346   : > { %v746_v29 = vadd.f32 %v1273_v37, %v745_v28 }
 0x348   : > { %v771_v30 = vmax.f32 %v746_v29, 0.0 }
 0x34a   : > { %1240 = vmatmul.msk.f32.gmra.mxu0 %vm577_vm1, %v771_v30 }
 0x34d   : > { %v748_v31 = vpop.f32.mrf.mxu3 }
 0x34e   : > { %v749_v32 = vadd.f32 %v1273_v37, %v748_v31 }
 0x350   : > { %v772_v42 = vmax.f32 %v749_v32, 0.0 }
 0x352   : > { %1241 = vmatmul.msk.f32.gmra.mxu0 %vm577_vm1, %v772_v42 }
 0x355   : > { %v751_v44 = vpop.f32.mrf.mxu3 }
 0x356   : > { %v752_v46 = vadd.f32 %v1273_v37, %v751_v44 }
 0x358   : > { %v773_v48 = vmax.f32 %v752_v46, 0.0 }
 0x35a   : > { %1242 = vmatmul.msk.f32.gmra.mxu0 %vm577_vm1, %v773_v48 }
 0x35d   : > { %v754_v54 = vpop.f32.mrf.mxu3 }
 0x35e   : > { %v755_v55 = vadd.f32 %v1273_v37, %v754_v54 }
 0x360   : > { %v774_v56 = vmax.f32 %v755_v55, 0.0 }
 0x362   : > { %1243 = vmatmul.msk.f32.gmra.mxu0 %vm577_vm1, %v774_v56 }
 0x365   : > { %v757_v57 = vpop.f32.mrf.mxu3 }
 0x366   : > { %v758_v58 = vadd.f32 %v1273_v37, %v757_v57 }
 0x368   : > { %v775_v59 = vmax.f32 %v758_v58, 0.0 }
 0x36a   : > { %1244 = vmatmul.msk.f32.gmra.mxu0 %vm577_vm1, %v775_v59 }
 0x36f   : > { %v849_v61 = vpop.f32.mrf.mxu0 }
 0x370   : > { %v850_v62 = vadd.f32 %v1647_v60, %v849_v61 }
 0x372   : > { %v897_v63 = vsel %vm374_vm0, %v850_v62, -inf }
 0x373   : > { %898 = vmax.xlane.f32.xlu0 %v897_v63 }
 0x377   : > { %v852_v0 = vpop.f32.mrf.mxu0 }
 0x378   : > { %v1652_v1 = vadd.f32 %v1647_v60, %v852_v0 }
 0x37a   : > { %v900_v2 = vsel %vm374_vm0, %v1652_v1, -inf }
 0x37b   : > { %901 = vmax.xlane.f32.xlu0 %v900_v2 }
 0x37f   : > { %v855_v3 = vpop.f32.mrf.mxu0 }
 0x380   : > { %v1657_v4 = vadd.f32 %v1647_v60, %v855_v3 }
 0x382   : > { %v903_v5 = vsel %vm374_vm0, %v1657_v4, -inf }
 0x383   : > { %904 = vmax.xlane.f32.xlu1 %v903_v5 }
 0x387   : > { %v858_v6 = vpop.f32.mrf.mxu0 }
 0x388   : > { %v1662_v33 = vadd.f32 %v1647_v60, %v858_v6 }
 0x38a   : > { %v906_v34 = vsel %vm374_vm0, %v1662_v33, -inf }
 0x38b   : > { %907 = vmax.xlane.f32.xlu1 %v906_v34 }
 0x38f   : > { %v861_v35 = vpop.f32.mrf.mxu0 }
 0x390   : > { %v1667_v36 = vadd.f32 %v1647_v60, %v861_v35 }
 0x392   : > { %v909_v37 = vsel %vm374_vm0, %v1667_v36, -inf }
 0x393   : > { %910 = vmax.xlane.f32.xlu2 %v909_v37 }
 0x397   : > { %v864_v38 = vpop.f32.mrf.mxu0 }
 0x398   : > { %v1672_v39 = vadd.f32 %v1647_v60, %v864_v38 }
 0x39a   : > { %v912_v40 = vsel %vm374_vm0, %v1672_v39, -inf }
 0x39b   : > { %913 = vmax.xlane.f32.xlu2 %v912_v40 }
 0x39f   : > { %v867_v41 = vpop.f32.mrf.mxu0 }
 0x3a0   : > { %v1677_v43 = vadd.f32 %v1647_v60, %v867_v41 }
 0x3a2   : > { %v915_v45 = vsel %vm374_vm0, %v1677_v43, -inf }
 0x3a3   : > { %916 = vmax.xlane.f32.xlu0 %v915_v45 }
 0x3a7   : > { %v870_v47 = vpop.f32.mrf.mxu0 }
 0x3a8   : > { %v1682_v49 = vadd.f32 %v1647_v60, %v870_v47 }
 0x3aa   : > { %v918_v50 = vsel %vm374_vm0, %v1682_v49, -inf }
 0x3ab   : > { %919 = vmax.xlane.f32.xlu1 %v918_v50 }
 0x3af   : > { %v873_v51 = vpop.f32.mrf.mxu0 }
 0x3b0   : > { %v1687_v52 = vadd.f32 %v1647_v60, %v873_v51 }
 0x3b2   : > { %v921_v53 = vsel %vm374_vm0, %v1687_v52, -inf }
 0x3b3   : > { %922 = vmax.xlane.f32.xlu2 %v921_v53 }
 0x3b7   : > { %v876_v7 = vpop.f32.mrf.mxu0 }
 0x3b8   : > { %v1692_v8 = vadd.f32 %v1647_v60, %v876_v7 }
 0x3ba   : > { %v924_v9 = vsel %vm374_vm0, %v1692_v8, -inf }
 0x3bb   : > { %925 = vmax.xlane.f32.xlu0 %v924_v9 }
 0x3bf   : > { %v879_v10 = vpop.f32.mrf.mxu0 }
 0x3c0   : > { %v1697_v11 = vadd.f32 %v1647_v60, %v879_v10 }
 0x3c2   : > { %v927_v12 = vsel %vm374_vm0, %v1697_v11, -inf }
 0x3c3   : > { %928 = vmax.xlane.f32.xlu1 %v927_v12 }
 0x3c7   : > { %v882_v13 = vpop.f32.mrf.mxu0 }
 0x3c8   : > { %v1702_v14 = vadd.f32 %v1647_v60, %v882_v13 }
 0x3ca   : > { %v930_v15 = vsel %vm374_vm0, %v1702_v14, -inf }
 0x3cb   : > { %931 = vmax.xlane.f32.xlu2 %v930_v15 }
 0x3cf   : > { %v885_v16 = vpop.f32.mrf.mxu0 }
 0x3d0   : > { %v1707_v17 = vadd.f32 %v1647_v60, %v885_v16 }
 0x3d2   : > { %v933_v18 = vsel %vm374_vm0, %v1707_v17, -inf }
 0x3d3   : > { %934 = vmax.xlane.f32.xlu0 %v933_v18 }
 0x3d7   : > { %v888_v19 = vpop.f32.mrf.mxu0 }
 0x3d8   : > { %v1712_v20 = vadd.f32 %v1647_v60, %v888_v19 }
 0x3da   : > { %v936_v21 = vsel %vm374_vm0, %v1712_v20, -inf }
 0x3db   : > { %937 = vmax.xlane.f32.xlu1 %v936_v21 }
 0x3df   : > { %v891_v22 = vpop.f32.mrf.mxu0 }
 0x3e0   : > { %v1717_v23 = vadd.f32 %v1647_v60, %v891_v22 }
 0x3e2   : > { %v939_v24 = vsel %vm374_vm0, %v1717_v23, -inf }
 0x3e3   : > { %940 = vmax.xlane.f32.xlu2 %v939_v24 }
 0x3e6   : > { %v899_v25 = vpop.xlane.xlu0 %898 }
 0x3e7   : > { %v1721_v26 = vsub.f32 %v850_v62, %v899_v25  ;;  %v894_v27 = vpop.f32.mrf.mxu0 }
 0x3e8   : > { %v1724_v28 = vadd.f32 %v1647_v60, %v894_v27 }
 0x3e9   : > { %v961_v29 = vmul.f32 1.442695, %v1721_v26 }
 0x3ea   : > { %v942_v30 = vsel %vm374_vm0, %v1724_v28, -inf }
 0x3eb   : > { %1275 = vpow2.f32 %v961_v29  ;;  %943 = vmax.xlane.f32.xlu0 %v942_v30 }
 0x3ee   : > { %v902_v31 = vpop.xlane.xlu0 %901 }
 0x3ef   : > { %v1730_v32 = vsub.f32 %v1652_v1, %v902_v31 }
 0x3f1   : > { %v1276_v42 = vpop.eup %1275  ;;  %v963_v44 = vmul.f32 1.442695, %v1730_v32 }
 0x3f2   : > { %v993_v46 = vsel %vm374_vm0, %v1276_v42, 0.0 }
 0x3f3   : > { %1277 = vpow2.f32 %v963_v44  ;;  %994 = vadd.xlane.f32.xlu1 %v993_v46 }
 0x3f6   : > { %v905_v48 = vpop.xlane.xlu1 %904 }
 0x3f7   : > { %v1735_v54 = vsub.f32 %v1657_v4, %v905_v48 }
 0x3f9   : > { %v1278_v55 = vpop.eup %1277  ;;  %v965_v56 = vmul.f32 1.442695, %v1735_v54 }
 0x3fa   : > { %v996_v57 = vsel %vm374_vm0, %v1278_v55, 0.0 }
 0x3fb   : > { %1279 = vpow2.f32 %v965_v56  ;;  %997 = vadd.xlane.f32.xlu2 %v996_v57 }
 0x3fe   : > { %v908_v58 = vpop.xlane.xlu1 %907 }
 0x3ff   : > { %v1740_v59 = vsub.f32 %v1662_v33, %v908_v58 }
 0x401   : > { %v1280_v60 = vpop.eup %1279  ;;  %v967_v61 = vmul.f32 1.442695, %v1740_v59 }
 0x402   : > { %v999_v62 = vsel %vm374_vm0, %v1280_v60, 0.0 }
 0x403   : > { %1281 = vpow2.f32 %v967_v61  ;;  %1000 = vadd.xlane.f32.xlu0 %v999_v62 }
 0x406   : > { %v911_v63 = vpop.xlane.xlu2 %910 }
 0x407   : > { %v1745_v0 = vsub.f32 %v1667_v36, %v911_v63 }
 0x409   : > { %v1282_v1 = vpop.eup %1281  ;;  %v969_v2 = vmul.f32 1.442695, %v1745_v0 }
 0x40a   : > { %v1002_v3 = vsel %vm374_vm0, %v1282_v1, 0.0 }
 0x40b   : > { %1283 = vpow2.f32 %v969_v2  ;;  %1003 = vadd.xlane.f32.xlu1 %v1002_v3 }
 0x40e   : > { %v914_v4 = vpop.xlane.xlu2 %913 }
 0x40f   : > { %v1750_v5 = vsub.f32 %v1672_v39, %v914_v4 }
 0x411   : > { %v1284_v6 = vpop.eup %1283  ;;  %v971_v33 = vmul.f32 1.442695, %v1750_v5 }
 0x412   : > { %v1005_v34 = vsel %vm374_vm0, %v1284_v6, 0.0 }
 0x413   : > { %1285 = vpow2.f32 %v971_v33  ;;  %1006 = vadd.xlane.f32.xlu2 %v1005_v34 }
 0x416   : > { %v917_v35 = vpop.xlane.xlu0 %916 }
 0x417   : > { %v1755_v36 = vsub.f32 %v1677_v43, %v917_v35 }
 0x419   : > { %v1286_v37 = vpop.eup %1285  ;;  %v973_v38 = vmul.f32 1.442695, %v1755_v36 }
 0x41a   : > { %v1008_v40 = vsel %vm374_vm0, %v1286_v37, 0.0 }
 0x41b   : > { %1287 = vpow2.f32 %v973_v38  ;;  %1009 = vadd.xlane.f32.xlu0 %v1008_v40 }
 0x41e   : > { %v920_v39 = vpop.xlane.xlu1 %919 }
 0x41f   : > { %v1760_v41 = vsub.f32 %v1682_v49, %v920_v39 }
 0x421   : > { %v1288_v45 = vpop.eup %1287  ;;  %v975_v47 = vmul.f32 1.442695, %v1760_v41 }
 0x422   : > { %v1011_v50 = vsel %vm374_vm0, %v1288_v45, 0.0 }
 0x423   : > { %1289 = vpow2.f32 %v975_v47  ;;  %1012 = vadd.xlane.f32.xlu1 %v1011_v50 }
 0x426   : > { %v923_v43 = vpop.xlane.xlu2 %922 }
 0x427   : > { %v1765_v51 = vsub.f32 %v1687_v52, %v923_v43 }
 0x429   : > { %v1290_v53 = vpop.eup %1289  ;;  %v977_v7 = vmul.f32 1.442695, %v1765_v51 }
 0x42a   : > { %v1014_v9 = vsel %vm374_vm0, %v1290_v53, 0.0 }
 0x42b   : > { %1291 = vpow2.f32 %v977_v7  ;;  %1015 = vadd.xlane.f32.xlu2 %v1014_v9 }
 0x42e   : > { %v926_v49 = vpop.xlane.xlu0 %925 }
 0x42f   : > { %v1770_v10 = vsub.f32 %v1692_v8, %v926_v49 }
 0x431   : > { %v1292_v12 = vpop.eup %1291  ;;  %v979_v13 = vmul.f32 1.442695, %v1770_v10 }
 0x432   : > { %v1017_v15 = vsel %vm374_vm0, %v1292_v12, 0.0 }
 0x433   : > { %1293 = vpow2.f32 %v979_v13  ;;  %1018 = vadd.xlane.f32.xlu0 %v1017_v15 }
 0x436   : > { %v929_v52 = vpop.xlane.xlu1 %928 }
 0x437   : > { %v1775_v16 = vsub.f32 %v1697_v11, %v929_v52 }
 0x439   : > { %v1294_v18 = vpop.eup %1293  ;;  %v981_v19 = vmul.f32 1.442695, %v1775_v16 }
 0x43a   : > { %v1020_v21 = vsel %vm374_vm0, %v1294_v18, 0.0 }
 0x43b   : > { %1295 = vpow2.f32 %v981_v19  ;;  %1021 = vadd.xlane.f32.xlu1 %v1020_v21 }
 0x43e   : > { %v932_v8 = vpop.xlane.xlu2 %931 }
 0x43f   : > { %v1780_v22 = vsub.f32 %v1702_v14, %v932_v8 }
 0x441   : > { %v1296_v24 = vpop.eup %1295  ;;  %v983_v25 = vmul.f32 1.442695, %v1780_v22 }
 0x442   : > { %v1023_v27 = vsel %vm374_vm0, %v1296_v24, 0.0 }
 0x443   : > { %1297 = vpow2.f32 %v983_v25  ;;  %1024 = vadd.xlane.f32.xlu2 %v1023_v27 }
 0x446   : > { %v935_v11 = vpop.xlane.xlu0 %934 }
 0x447   : > { %v1785_v29 = vsub.f32 %v1707_v17, %v935_v11 }
 0x449   : > { %v1298_v30 = vpop.eup %1297  ;;  %v985_v31 = vmul.f32 1.442695, %v1785_v29 }
 0x44a   : > { %v1026_v42 = vsel %vm374_vm0, %v1298_v30, 0.0 }
 0x44b   : > { %1299 = vpow2.f32 %v985_v31  ;;  %1027 = vadd.xlane.f32.xlu0 %v1026_v42 }
 0x44e   : > { %v938_v14 = vpop.xlane.xlu1 %937 }
 0x44f   : > { %v1790_v44 = vsub.f32 %v1712_v20, %v938_v14 }
 0x451   : > { %v1300_v46 = vpop.eup %1299  ;;  %v987_v48 = vmul.f32 1.442695, %v1790_v44 }
 0x452   : > { %v1029_v55 = vsel %vm374_vm0, %v1300_v46, 0.0 }
 0x453   : > { %1301 = vpow2.f32 %v987_v48  ;;  %1030 = vadd.xlane.f32.xlu1 %v1029_v55 }
 0x456   : > { %v941_v17 = vpop.xlane.xlu2 %940 }
 0x457   : > { %v1795_v56 = vsub.f32 %v1717_v23, %v941_v17 }
 0x459   : > { %v1302_v57 = vpop.eup %1301  ;;  %v989_v58 = vmul.f32 1.442695, %v1795_v56 }
 0x45a   : > { %v1032_v60 = vsel %vm374_vm0, %v1302_v57, 0.0 }
 0x45b   : > { %1303 = vpow2.f32 %v989_v58  ;;  %1033 = vadd.xlane.f32.xlu2 %v1032_v60 }
 0x45e   : > { %v944_v20 = vpop.xlane.xlu0 %943 }
 0x45f   : > { %v1800_v61 = vsub.f32 %v1724_v28, %v944_v20 }
 0x461   : > { %v1304_v62 = vpop.eup %1303  ;;  %v991_v63 = vmul.f32 1.442695, %v1800_v61 }
 0x462   : > { %v1035_v1 = vsel %vm374_vm0, %v1304_v62, 0.0 }
 0x463   : > { %1305 = vpow2.f32 %v991_v63  ;;  %1036 = vadd.xlane.f32.xlu0 %v1035_v1 }
 0x466   : > { %v995_v23 = vpop.xlane.xlu1 %994 }
 0x467   : > { %1307 = vlog2.f32 %v995_v23 }
 0x469   : > { %v1306_v2 = vpop.eup %1305 }
 0x46a   : > { %v1038_v3 = vsel %vm374_vm0, %v1306_v2, 0.0 }
 0x46b   : > { %1039 = vadd.xlane.f32.xlu1 %v1038_v3 }
 0x46d   : > { %v1308_v4 = vpop.eup %1307 }
 0x46e   : > { %v1042_v6 = vmul.f32 0.6931472, %v1308_v4  ;;  %v998_v33 = vpop.xlane.xlu2 %997 }
 0x46f   : > { %1309 = vlog2.f32 %v998_v33 }
 0x470   : > { %v1073_v28 = vsub.f32 %v1721_v26, %v1042_v6 }
 0x472   : > { %1089 = vst.msk [vmem:[%s1809_s23] sm:$0xff] %vm374_vm0, %v1073_v28 }
 0x475   : > { %v1310_v34 = vpop.eup %1309 }
 0x476   : > { %v1044_v35 = vmul.f32 0.6931472, %v1310_v34  ;;  %v1001_v37 = vpop.xlane.xlu0 %1000 }
 0x477   : > { %1311 = vlog2.f32 %v1001_v37 }
 0x478   : > { %v1074_v38 = vsub.f32 %v1730_v32, %v1044_v35 }
 0x47a   : > { %1090 = vst.msk [vmem:[%s1809_s23 + $0x8] sm:$0xff] %vm374_vm0, %v1074_v38 }
 0x47d   : > { %v1312_v40 = vpop.eup %1311 }
 0x47e   : > { %v1046_v39 = vmul.f32 0.6931472, %v1312_v40  ;;  %v1004_v45 = vpop.xlane.xlu1 %1003 }
 0x47f   : > { %1313 = vlog2.f32 %v1004_v45 }
 0x480   : > { %v1075_v47 = vsub.f32 %v1735_v54, %v1046_v39 }
 0x482   : > { %1091 = vst.msk [vmem:[%s1809_s23 + $0x10] sm:$0xff] %vm374_vm0, %v1075_v47 }
 0x485   : > { %v1314_v26 = vpop.eup %1313 }
 0x486   : > { %v1048_v50 = vmul.f32 0.6931472, %v1314_v26  ;;  %v1007_v43 = vpop.xlane.xlu2 %1006 }
 0x487   : > { %1315 = vlog2.f32 %v1007_v43 }
 0x488   : > { %v1076_v53 = vsub.f32 %v1740_v59, %v1048_v50 }
 0x48a   : > { %1092 = vst.msk [vmem:[%s1809_s23 + $0x18] sm:$0xff] %vm374_vm0, %v1076_v53 }
 0x48d   : > { %v1316_v32 = vpop.eup %1315 }
 0x48e   : > { %v1050_v7 = vmul.f32 0.6931472, %v1316_v32  ;;  %v1010_v9 = vpop.xlane.xlu0 %1009 }
 0x48f   : > { %1317 = vlog2.f32 %v1010_v9 }
 0x490   : > { %v1077_v49 = vsub.f32 %v1745_v0, %v1050_v7 }
 0x492   : > { %1093 = vst.msk [vmem:[%s1809_s23 + $0x20] sm:$0xff] %vm374_vm0, %v1077_v49 }
 0x495   : > { %v1318_v54 = vpop.eup %1317 }
 0x496   : > { %v1052_v12 = vmul.f32 0.6931472, %v1318_v54  ;;  %v1013_v13 = vpop.xlane.xlu1 %1012 }
 0x497   : > { %1319 = vlog2.f32 %v1013_v13 }
 0x498   : > { %v1078_v15 = vsub.f32 %v1750_v5, %v1052_v12 }
 0x49a   : > { %1094 = vst.msk [vmem:[%s1809_s23 + $0x28] sm:$0xff] %vm374_vm0, %v1078_v15 }
 0x49d   : > { %v1320_v59 = vpop.eup %1319 }
 0x49e   : > { %v1054_v52 = vmul.f32 0.6931472, %v1320_v59  ;;  %v1016_v18 = vpop.xlane.xlu2 %1015 }
 0x49f   : > { %1321 = vlog2.f32 %v1016_v18 }
 0x4a0   : > { %v1079_v19 = vsub.f32 %v1755_v36, %v1054_v52 }
 0x4a2   : > { %1095 = vst.msk [vmem:[%s1809_s23 + $0x30] sm:$0xff] %vm374_vm0, %v1079_v19 }
 0x4a5   : > { %v1322_v0 = vpop.eup %1321 }
 0x4a6   : > { %v1056_v21 = vmul.f32 0.6931472, %v1322_v0  ;;  %v1019_v8 = vpop.xlane.xlu0 %1018 }
 0x4a7   : > { %1323 = vlog2.f32 %v1019_v8 }
 0x4a8   : > { %v1080_v24 = vsub.f32 %v1760_v41, %v1056_v21 }
 0x4aa   : > { %1096 = vst.msk [vmem:[%s1809_s23 + $0x38] sm:$0xff] %vm374_vm0, %v1080_v24 }
 0x4ad   : > { %v1324_v5 = vpop.eup %1323 }
 0x4ae   : > { %v1058_v25 = vmul.f32 0.6931472, %v1324_v5  ;;  %v1022_v27 = vpop.xlane.xlu1 %1021 }
 0x4af   : > { %1325 = vlog2.f32 %v1022_v27 }
 0x4b0   : > { %v1081_v11 = vsub.f32 %v1765_v51, %v1058_v25 }
 0x4b2   : > { %1097 = vst.msk [vmem:[%s1809_s23 + $0x40] sm:$0xff] %vm374_vm0, %v1081_v11 }
 0x4b5   : > { %v1326_v36 = vpop.eup %1325 }
 0x4b6   : > { %v1060_v30 = vmul.f32 0.6931472, %v1326_v36  ;;  %v1025_v31 = vpop.xlane.xlu2 %1024 }
 0x4b7   : > { %1327 = vlog2.f32 %v1025_v31 }
 0x4b8   : > { %v1082_v42 = vsub.f32 %v1770_v10, %v1060_v30 }
 0x4ba   : > { %1098 = vst.msk [vmem:[%s1809_s23 + $0x48] sm:$0xff] %vm374_vm0, %v1082_v42 }
 0x4bd   : > { %v1328_v41 = vpop.eup %1327 }
 0x4be   : > { %v1062_v14 = vmul.f32 0.6931472, %v1328_v41  ;;  %v1028_v46 = vpop.xlane.xlu0 %1027 }
 0x4bf   : > { %1329 = vlog2.f32 %v1028_v46 }
 0x4c0   : > { %v1083_v48 = vsub.f32 %v1775_v16, %v1062_v14 }
 0x4c2   : > { %1099 = vst.msk [vmem:[%s1809_s23 + $0x50] sm:$0xff] %vm374_vm0, %v1083_v48 }
 0x4c5   : > { %v1330_v51 = vpop.eup %1329 }
 0x4c6   : > { %v1064_v55 = vmul.f32 0.6931472, %v1330_v51  ;;  %v1031_v17 = vpop.xlane.xlu1 %1030 }
 0x4c7   : > { %1331 = vlog2.f32 %v1031_v17 }
 0x4c8   : > { %v1084_v57 = vsub.f32 %v1780_v22, %v1064_v55 }
 0x4ca   : > { %1100 = vst.msk [vmem:[%s1809_s23 + $0x58] sm:$0xff] %vm374_vm0, %v1084_v57 }
 0x4cd   : > { %v1332_v10 = vpop.eup %1331 }
 0x4ce   : > { %v1066_v58 = vmul.f32 0.6931472, %v1332_v10  ;;  %v1034_v60 = vpop.xlane.xlu2 %1033 }
 0x4cf   : > { %1333 = vlog2.f32 %v1034_v60 }
 0x4d0   : > { %v1085_v20 = vsub.f32 %v1785_v29, %v1066_v58 }
 0x4d2   : > { %1101 = vst.msk [vmem:[%s1809_s23 + $0x60] sm:$0xff] %vm374_vm0, %v1085_v20 }
 0x4d5   : > { %v1334_v16 = vpop.eup %1333 }
 0x4d6   : > { %v1068_v62 = vmul.f32 0.6931472, %v1334_v16  ;;  %v1037_v63 = vpop.xlane.xlu0 %1036 }
 0x4d7   : > { %1335 = vlog2.f32 %v1037_v63 }
 0x4d8   : > { %v1086_v1 = vsub.f32 %v1790_v44, %v1068_v62 }
 0x4da   : > { %1102 = vst.msk [vmem:[%s1809_s23 + $0x68] sm:$0xff] %vm374_vm0, %v1086_v1 }
 0x4dd   : > { %v1336_v22 = vpop.eup %1335 }
 0x4de   : > { %v1070_v23 = vmul.f32 0.6931472, %v1336_v22  ;;  %v1040_v2 = vpop.xlane.xlu1 %1039 }
 0x4df   : > { %1337 = vlog2.f32 %v1040_v2 }
 0x4e0   : > { %v1087_v3 = vsub.f32 %v1795_v56, %v1070_v23 }
 0x4e2   : > { %1103 = vst.msk [vmem:[%s1809_s23 + $0x70] sm:$0xff] %vm374_vm0, %v1087_v3 }
 0x4e5   : > { %v1338_v29 = vpop.eup %1337 }
 0x4e6   : > { %v1072_v4 = vmul.f32 0.6931472, %v1338_v29 }
 0x4e8   : > { %v1088_v6 = vsub.f32 %v1800_v61, %v1072_v4 }
 0x4ea   : > { %1104 = vst.msk [vmem:[%s1809_s23 + $0x78] sm:$0xff] %vm374_vm0, %v1088_v6 }
 0x4eb PF: > { %s19_s27 = sadd.s32 1, %s1379_s27  }
 0x4ec   : > { %p16_p7 = scmp.ge.s32.totalorder %s19_s27, 4  }
 0x4ee   :  { %18 = sbr.rel (!%p16_p7) target bundleno = 1 (0x1), region = 90 }
 0x4f3   :  { %1126 = vsyncpa [#allocation3], 1 }
 0x4f4   :  { %1128 = vsyncpa [#allocation3 + $0x1], 1 }

</bundles_post_ra>
